<compile_context>
chip_gen: v7x
topology: tpu7x:2x2x1
jax: 0.10.0
libtpu: 0.0.40
codegen_flags: <defaults>
</compile_context>

<pallas_src>
import functools

import jax
import jax.numpy as jnp
from jax.experimental import pallas as pl
from jax.experimental.pallas import tpu as pltpu


def _round_up(x: int, m: int) -> int:
    return ((x + m - 1) // m) * m


def _encoder_mlp_kernel(
    x_ref,                     # (bm, in_dim)          f32
    w1_ref, b1_ref,            # (in_dim, h1p) bf16 / (1, h1p) f32
    w2_ref, b2_ref,            # (h1p, h2p)    bf16 / (1, h2p) f32
    w3_ref, b3_ref,            # (h2p, h3p)    bf16 / (1, h3p) f32
    wh_ref, bh_ref,            # (h3p, head_pad) bf16 / (1, head_pad) f32 (fused mu|var)
    out_ref,                   # (bm, head_pad) f32
):
    """Whole MLP hot path: 4 MXU matmuls + ReLU/Tanh fused in one body."""
    bf16 = jnp.bfloat16

    # Cast to bf16 at the dot input (no separate wrapper-side cast pass).
    x = x_ref[...].astype(bf16)

    h = jnp.dot(x, w1_ref[...], preferred_element_type=jnp.float32) + b1_ref[...]
    h = jnp.maximum(h, 0.0)

    h = jnp.dot(h.astype(bf16), w2_ref[...], preferred_element_type=jnp.float32) + b2_ref[...]
    h = jnp.maximum(h, 0.0)

    h = jnp.dot(h.astype(bf16), w3_ref[...], preferred_element_type=jnp.float32) + b3_ref[...]
    h = jnp.maximum(h, 0.0)

    # Fused mu|log_var head: single matmul, single tanh, one lane-dense f32 store.
    z = jnp.dot(h.astype(bf16), wh_ref[...], preferred_element_type=jnp.float32) + bh_ref[...]
    out_ref[...] = jnp.tanh(z).astype(out_ref.dtype)


def _choose_bm(B: int, block_b: int) -> int:
    """Pick a batch tile: multiple of 128, <= requested block_b, and (when there
    is enough work) small enough that grid_m >= 2 so both v7x TensorCores run."""
    b_ceil = _round_up(B, 128)                       # smallest 128-multiple covering B
    bm = min(_round_up(block_b, 128), b_ceil)
    if b_ceil >= 2 * 128:
        # keep at least 2 grid steps (megacore sharding on v7x)
        bm = min(bm, _round_up(pl.cdiv(b_ceil, 2), 128))
    return max(bm, 128)


@functools.partial(jax.jit, static_argnames=("latent_dim", "block_b"))
def encoder_mlp_forward(x, params, *, latent_dim, block_b=1024):
    """params: bf16 weights stored pre-transposed (in, out) with hidden dims
    zero-padded to multiples of 128; f32 biases (1, out).  The mu/log_var heads
    are pre-fused into params['wh'] / params['bh'] (output padded to 128 lanes).
    """
    B, in_dim = x.shape
    head_pad = params["wh"].shape[1]

    bm = _choose_bm(B, block_b)
    grid_m = pl.cdiv(B, bm)
    B_pad = grid_m * bm

    x_in = x
    if B_pad != B:
        # TODO(synk): have the producer deliver x already padded to the tile so
        # this extra HBM copy disappears entirely.
        x_in = jnp.pad(x, ((0, B_pad - B), (0, 0)))

    def full_spec(arr):
        return pl.BlockSpec(arr.shape, lambda i: (0, 0))

    in_specs = [
        pl.BlockSpec((bm, in_dim), lambda i: (i, 0)),     # x: tiled over batch
        full_spec(params["w1"]), full_spec(params["b1"]),
        full_spec(params["w2"]), full_spec(params["b2"]),
        full_spec(params["w3"]), full_spec(params["b3"]),
        full_spec(params["wh"]), full_spec(params["bh"]),
    ]
    out_specs = pl.BlockSpec((bm, head_pad), lambda i: (i, 0))
    out_shape = jax.ShapeDtypeStruct((B_pad, head_pad), jnp.float32)

    out = pl.pallas_call(
        _encoder_mlp_kernel,
        grid=(grid_m,),
        in_specs=in_specs,
        out_specs=out_specs,
        out_shape=out_shape,
        compiler_params=pltpu.CompilerParams(
            dimension_semantics=("parallel",),
        ),
    )(
        x_in,
        params["w1"], params["b1"],
        params["w2"], params["b2"],
        params["w3"], params["b3"],
        params["wh"], params["bh"],
    )

    out = out[:B]
    mu = out[:, :latent_dim]
    log_var = out[:, latent_dim:2 * latent_dim]
    return [mu, log_var]


def init_params(key, in_dim, arch, latent_dim):
    """nn.Linear-style init U(-1/sqrt(fan_in), 1/sqrt(fan_in)).

    Weights stored transposed (in_features, out_features), cast to bf16, and
    zero-padded so every hidden width is a multiple of 128 lanes (lane-dense
    activations, full-K MXU passes).  The fc_mu / fc_var heads are fused into a
    single weight of width 2*latent_dim, zero-padded to 128 output columns for
    a lane-dense output store.  Biases kept f32 (elementwise path stays f32 on
    v5e); padded bias entries are zero so ReLU of padded columns stays zero.
    """
    h1, h2, h3 = arch[1], arch[2], arch[3]
    h1p, h2p, h3p = _round_up(h1, 128), _round_up(h2, 128), _round_up(h3, 128)

    dims = [
        ("1", in_dim, h1),
        ("2", h1, h2),
        ("3", h2, h3),
        ("mu", h3, latent_dim),
        ("v", h3, latent_dim),
    ]
    raw = {}
    for name, fan_in, fan_out in dims:
        key, kw, kb = jax.random.split(key, 3)
        bound = 1.0 / (fan_in ** 0.5)
        raw[f"w{name}"] = jax.random.uniform(kw, (fan_in, fan_out), jnp.float32, -bound, bound)
        raw[f"b{name}"] = jax.random.uniform(kb, (1, fan_out), jnp.float32, -bound, bound)

    # Fuse mu|var heads, then pad everything to lane-dense widths.
    wh = jnp.concatenate([raw["wmu"], raw["wv"]], axis=1)           # (h3, 2*latent)
    bh = jnp.concatenate([raw["bmu"], raw["bv"]], axis=1)           # (1, 2*latent)
    head_out = 2 * latent_dim
    head_pad = _round_up(head_out, 128)

    w1 = jnp.pad(raw["w1"], ((0, 0), (0, h1p - h1)))
    b1 = jnp.pad(raw["b1"], ((0, 0), (0, h1p - h1)))
    w2 = jnp.pad(raw["w2"], ((0, h1p - h1), (0, h2p - h2)))
    b2 = jnp.pad(raw["b2"], ((0, 0), (0, h2p - h2)))
    w3 = jnp.pad(raw["w3"], ((0, h2p - h2), (0, h3p - h3)))
    b3 = jnp.pad(raw["b3"], ((0, 0), (0, h3p - h3)))
    wh = jnp.pad(wh, ((0, h3p - h3), (0, head_pad - head_out)))
    bh = jnp.pad(bh, ((0, 0), (0, head_pad - head_out)))

    params = {
        "w1": w1.astype(jnp.bfloat16), "b1": b1,
        "w2": w2.astype(jnp.bfloat16), "b2": b2,
        "w3": w3.astype(jnp.bfloat16), "b3": b3,
        "wh": wh.astype(jnp.bfloat16), "bh": bh,
    }
    return params


def reference_forward(x, params, latent_dim):
    """Pure-JAX reference mirroring the kernel's bf16-at-the-MXU numerics.

    Note: this validates self-consistency with the kernel's bf16 dot inputs,
    not bit-fidelity to the original f32 PyTorch module.
    """
    f32 = jnp.float32

    def bf(a):  # quantize to bf16, compute in f32 (matches kernel dot inputs)
        return a.astype(jnp.bfloat16).astype(f32)

    w1 = params["w1"].astype(f32)
    w2 = params["w2"].astype(f32)
    w3 = params["w3"].astype(f32)
    wh = params["wh"].astype(f32)

    h = jnp.maximum(bf(x) @ w1 + params["b1"], 0.0)
    h = jnp.maximum(bf(h) @ w2 + params["b2"], 0.0)
    h = jnp.maximum(bf(h) @ w3 + params["b3"], 0.0)
    z = jnp.tanh(bf(h) @ wh + params["bh"])
    mu = z[:, :latent_dim]
    log_var = z[:, latent_dim:2 * latent_dim]
    return [mu, log_var]


if __name__ == "__main__":
    # Small shapes consistent with the module; B deliberately not a multiple of
    # 128 so the cdiv/pad path is exercised, and big enough to give a 2-step
    # "parallel" batch grid (v7x megacore path).
    B = 200
    in_dim = 32
    arch = [32, 64, 64, 64]   # arch[0] is unused by the module (matches PyTorch)
    latent_dim = 16

    key = jax.random.PRNGKey(0)
    key, kx = jax.random.split(key)
    x = jax.random.normal(kx, (B, in_dim), dtype=jnp.float32)

    params = init_params(key, in_dim, arch, latent_dim)

    mu, log_var = encoder_mlp_forward(x, params, latent_dim=latent_dim)
    jax.block_until_ready(mu)
    jax.block_until_ready(log_var)

    mu_ref, log_var_ref = reference_forward(x, params, latent_dim)
    assert mu.shape == (B, latent_dim) and log_var.shape == (B, latent_dim)
    assert jnp.allclose(mu, mu_ref, atol=2e-2, rtol=2e-2), float(jnp.max(jnp.abs(mu - mu_ref)))
    assert jnp.allclose(log_var, log_var_ref, atol=2e-2, rtol=2e-2), float(jnp.max(jnp.abs(log_var - log_var_ref)))

    print("KERNEL_OK")
</pallas_src>

<mosaic_0001>
module attributes {stable_mosaic.version = 11 : i64} {
  func.func @_encoder_mlp_kernel(%arg0: i32, %arg1: memref<128x32xf32, #tpu.memory_space<vmem>>, %arg2: memref<32x128xbf16, #tpu.memory_space<vmem>>, %arg3: memref<1x128xf32, #tpu.memory_space<vmem>>, %arg4: memref<128x128xbf16, #tpu.memory_space<vmem>>, %arg5: memref<1x128xf32, #tpu.memory_space<vmem>>, %arg6: memref<128x128xbf16, #tpu.memory_space<vmem>>, %arg7: memref<1x128xf32, #tpu.memory_space<vmem>>, %arg8: memref<128x128xbf16, #tpu.memory_space<vmem>>, %arg9: memref<1x128xf32, #tpu.memory_space<vmem>>, %arg10: memref<128x128xf32, #tpu.memory_space<vmem>>) attributes {dimension_semantics = [#tpu.dimension_semantics<parallel>], iteration_bounds = array<i64: 2>, scalar_prefetch = 0 : i64, scratch_operands = 0 : i64, tpu.core_type = #tpu.core_type<tc>, window_params = [{transform_indices = @transform_0, window_bounds = array<i64: 128, 32>}, {pipeline_mode = #tpu.pipeline_mode<synchronous>, transform_indices = @transform_1, window_bounds = array<i64: 32, 128>}, {pipeline_mode = #tpu.pipeline_mode<synchronous>, transform_indices = @transform_2, window_bounds = array<i64: 1, 128>}, {pipeline_mode = #tpu.pipeline_mode<synchronous>, transform_indices = @transform_3, window_bounds = array<i64: 128, 128>}, {pipeline_mode = #tpu.pipeline_mode<synchronous>, transform_indices = @transform_4, window_bounds = array<i64: 1, 128>}, {pipeline_mode = #tpu.pipeline_mode<synchronous>, transform_indices = @transform_5, window_bounds = array<i64: 128, 128>}, {pipeline_mode = #tpu.pipeline_mode<synchronous>, transform_indices = @transform_6, window_bounds = array<i64: 1, 128>}, {pipeline_mode = #tpu.pipeline_mode<synchronous>, transform_indices = @transform_7, window_bounds = array<i64: 128, 128>}, {pipeline_mode = #tpu.pipeline_mode<synchronous>, transform_indices = @transform_8, window_bounds = array<i64: 1, 128>}, {transform_indices = @transform_9, window_bounds = array<i64: 128, 128>}]} {
    %c0 = arith.constant 0 : index
    %c0_0 = arith.constant 0 : index
    %0 = vector.load %arg1[%c0, %c0_0] : memref<128x32xf32, #tpu.memory_space<vmem>>, vector<128x32xf32>
    %1 = arith.truncf %0 : vector<128x32xf32> to vector<128x32xbf16>
    %c0_1 = arith.constant 0 : index
    %c0_2 = arith.constant 0 : index
    %2 = vector.load %arg2[%c0_1, %c0_2] : memref<32x128xbf16, #tpu.memory_space<vmem>>, vector<32x128xbf16>
    %cst = arith.constant dense<0.000000e+00> : vector<128x128xf32>
    %3 = tpu.matmul %1, %2, %cst {dimension_numbers = #tpu.dot_dimension_numbers<[1], [0], [0], [1], [0, 0, 1, 1], [], []>} : vector<128x32xbf16>, vector<32x128xbf16>, vector<128x128xf32> -> vector<128x128xf32>
    %c0_3 = arith.constant 0 : index
    %c0_4 = arith.constant 0 : index
    %4 = vector.load %arg3[%c0_3, %c0_4] : memref<1x128xf32, #tpu.memory_space<vmem>>, vector<1x128xf32>
    %5 = vector.broadcast %4 : vector<1x128xf32> to vector<128x128xf32>
    %6 = arith.addf %3, %5 : vector<128x128xf32>
    %cst_5 = arith.constant 0.000000e+00 : f32
    %7 = vector.broadcast %cst_5 : f32 to vector<128x128xf32>
    %8 = arith.maximumf %6, %7 : vector<128x128xf32>
    %9 = arith.truncf %8 : vector<128x128xf32> to vector<128x128xbf16>
    %c0_6 = arith.constant 0 : index
    %c0_7 = arith.constant 0 : index
    %10 = vector.load %arg4[%c0_6, %c0_7] : memref<128x128xbf16, #tpu.memory_space<vmem>>, vector<128x128xbf16>
    %cst_8 = arith.constant dense<0.000000e+00> : vector<128x128xf32>
    %11 = tpu.matmul %9, %10, %cst_8 {dimension_numbers = #tpu.dot_dimension_numbers<[1], [0], [0], [1], [0, 0, 1, 1], [], []>} : vector<128x128xbf16>, vector<128x128xbf16>, vector<128x128xf32> -> vector<128x128xf32>
    %c0_9 = arith.constant 0 : index
    %c0_10 = arith.constant 0 : index
    %12 = vector.load %arg5[%c0_9, %c0_10] : memref<1x128xf32, #tpu.memory_space<vmem>>, vector<1x128xf32>
    %13 = vector.broadcast %12 : vector<1x128xf32> to vector<128x128xf32>
    %14 = arith.addf %11, %13 : vector<128x128xf32>
    %cst_11 = arith.constant 0.000000e+00 : f32
    %15 = vector.broadcast %cst_11 : f32 to vector<128x128xf32>
    %16 = arith.maximumf %14, %15 : vector<128x128xf32>
    %17 = arith.truncf %16 : vector<128x128xf32> to vector<128x128xbf16>
    %c0_12 = arith.constant 0 : index
    %c0_13 = arith.constant 0 : index
    %18 = vector.load %arg6[%c0_12, %c0_13] : memref<128x128xbf16, #tpu.memory_space<vmem>>, vector<128x128xbf16>
    %cst_14 = arith.constant dense<0.000000e+00> : vector<128x128xf32>
    %19 = tpu.matmul %17, %18, %cst_14 {dimension_numbers = #tpu.dot_dimension_numbers<[1], [0], [0], [1], [0, 0, 1, 1], [], []>} : vector<128x128xbf16>, vector<128x128xbf16>, vector<128x128xf32> -> vector<128x128xf32>
    %c0_15 = arith.constant 0 : index
    %c0_16 = arith.constant 0 : index
    %20 = vector.load %arg7[%c0_15, %c0_16] : memref<1x128xf32, #tpu.memory_space<vmem>>, vector<1x128xf32>
    %21 = vector.broadcast %20 : vector<1x128xf32> to vector<128x128xf32>
    %22 = arith.addf %19, %21 : vector<128x128xf32>
    %cst_17 = arith.constant 0.000000e+00 : f32
    %23 = vector.broadcast %cst_17 : f32 to vector<128x128xf32>
    %24 = arith.maximumf %22, %23 : vector<128x128xf32>
    %25 = arith.truncf %24 : vector<128x128xf32> to vector<128x128xbf16>
    %c0_18 = arith.constant 0 : index
    %c0_19 = arith.constant 0 : index
    %26 = vector.load %arg8[%c0_18, %c0_19] : memref<128x128xbf16, #tpu.memory_space<vmem>>, vector<128x128xbf16>
    %cst_20 = arith.constant dense<0.000000e+00> : vector<128x128xf32>
    %27 = tpu.matmul %25, %26, %cst_20 {dimension_numbers = #tpu.dot_dimension_numbers<[1], [0], [0], [1], [0, 0, 1, 1], [], []>} : vector<128x128xbf16>, vector<128x128xbf16>, vector<128x128xf32> -> vector<128x128xf32>
    %c0_21 = arith.constant 0 : index
    %c0_22 = arith.constant 0 : index
    %28 = vector.load %arg9[%c0_21, %c0_22] : memref<1x128xf32, #tpu.memory_space<vmem>>, vector<1x128xf32>
    %29 = vector.broadcast %28 : vector<1x128xf32> to vector<128x128xf32>
    %30 = arith.addf %27, %29 : vector<128x128xf32>
    %31 = math.tanh %30 : vector<128x128xf32>
    %c0_23 = arith.constant 0 : index
    %c0_24 = arith.constant 0 : index
    %32 = vector.load %arg10[%c0_23, %c0_24] : memref<128x128xf32, #tpu.memory_space<vmem>>, vector<128x128xf32>
    tpu.vector_store %arg10[%c0_23, %c0_24], %31 {strides = array<i32>} : memref<128x128xf32, #tpu.memory_space<vmem>>, vector<128x128xf32>,
    return
  }
  func.func @transform_0(%arg0: i32) -> (i32, i32) {
    %c0_i32 = arith.constant 0 : i32
    %c0_i32_0 = arith.constant 0 : i32
    return %arg0, %c0_i32 : i32, i32
  }
  func.func @transform_1(%arg0: i32) -> (i32, i32) {
    %c0_i32 = arith.constant 0 : i32
    %c0_i32_0 = arith.constant 0 : i32
    %c0_i32_1 = arith.constant 0 : i32
    return %c0_i32, %c0_i32_0 : i32, i32
  }
  func.func @transform_2(%arg0: i32) -> (i32, i32) {
    %c0_i32 = arith.constant 0 : i32
    %c0_i32_0 = arith.constant 0 : i32
    %c0_i32_1 = arith.constant 0 : i32
    return %c0_i32, %c0_i32_0 : i32, i32
  }
  func.func @transform_3(%arg0: i32) -> (i32, i32) {
    %c0_i32 = arith.constant 0 : i32
    %c0_i32_0 = arith.constant 0 : i32
    %c0_i32_1 = arith.constant 0 : i32
    return %c0_i32, %c0_i32_0 : i32, i32
  }
  func.func @transform_4(%arg0: i32) -> (i32, i32) {
    %c0_i32 = arith.constant 0 : i32
    %c0_i32_0 = arith.constant 0 : i32
    %c0_i32_1 = arith.constant 0 : i32
    return %c0_i32, %c0_i32_0 : i32, i32
  }
  func.func @transform_5(%arg0: i32) -> (i32, i32) {
    %c0_i32 = arith.constant 0 : i32
    %c0_i32_0 = arith.constant 0 : i32
    %c0_i32_1 = arith.constant 0 : i32
    return %c0_i32, %c0_i32_0 : i32, i32
  }
  func.func @transform_6(%arg0: i32) -> (i32, i32) {
    %c0_i32 = arith.constant 0 : i32
    %c0_i32_0 = arith.constant 0 : i32
    %c0_i32_1 = arith.constant 0 : i32
    return %c0_i32, %c0_i32_0 : i32, i32
  }
  func.func @transform_7(%arg0: i32) -> (i32, i32) {
    %c0_i32 = arith.constant 0 : i32
    %c0_i32_0 = arith.constant 0 : i32
    %c0_i32_1 = arith.constant 0 : i32
    return %c0_i32, %c0_i32_0 : i32, i32
  }
  func.func @transform_8(%arg0: i32) -> (i32, i32) {
    %c0_i32 = arith.constant 0 : i32
    %c0_i32_0 = arith.constant 0 : i32
    %c0_i32_1 = arith.constant 0 : i32
    return %c0_i32, %c0_i32_0 : i32, i32
  }
  func.func @transform_9(%arg0: i32) -> (i32, i32) {
    %c0_i32 = arith.constant 0 : i32
    %c0_i32_0 = arith.constant 0 : i32
    return %arg0, %c0_i32 : i32, i32
  }
}

</mosaic_0001>

<bundles_post_ra>
// kernel: encoder_mlp_forward.1
= control target key start
LH: loop header
LB: loop body
LE: loop exit
PB: predicated region body
PF: predicated region fallthrough
CT: control target
= control target key end

     0   :  { %s1533_s30 = smov 0   ;;  %s1745_s0 = inlined_call_operand.vmem [shape: f32[256,32], index: 0, kind: input, shape index: {}]   ;;  %s1746_s1 = inlined_call_operand.vmem [shape: bf16[32,128], index: 1, kind: input, shape index: {}]   ;;  %s1747_s2 = inlined_call_operand.vmem [shape: f32[1,128], index: 2, kind: input, shape index: {}]   ;;  %s1748_s3 = inlined_call_operand.vmem [shape: bf16[128,128], index: 3, kind: input, shape index: {}]   ;;  %s1749_s4 = inlined_call_operand.vmem [shape: f32[1,128], index: 4, kind: input, shape index: {}]   ;;  %s1750_s5 = inlined_call_operand.vmem [shape: bf16[128,128], index: 5, kind: input, shape index: {}]   ;;  %s1751_s6 = inlined_call_operand.vmem [shape: f32[1,128], index: 6, kind: input, shape index: {}]   ;;  %s1752_s7 = inlined_call_operand.vmem [shape: bf16[128,128], index: 7, kind: input, shape index: {}]   ;;  %s1753_s8 = inlined_call_operand.vmem [shape: f32[1,128], index: 8, kind: input, shape index: {}]   ;;  %s1754_s9 = inlined_call_operand.vmem [shape: f32[256,128], index: 9, kind: output, shape index: {}]  }
   0x1 LB: > { %s1170_s10 = sadd.s32 4294967295, %s1481_s30   ;;  %p1174_p0 = scmp.ge.s32.totalorder %s1481_s30, 1  ;;  %s1481_s30 = sphi %s1533_s30, %s19_s30  }
   0x2   : > { %p288_p1 = scmp.lt.s32.totalorder %s1481_s30, 3 }
   0x4   : > { %p289_p2 = pnand %p1174_p0, %p288_p1 }
   0x5   : > { %v1417_v0 = vld [vmem:[%s1746_s1] sm:$0xff] (!%p289_p2)   ;;  %s1175_s13 = sshll.u32 (!%p289_p2), %s1170_s10, 4  ;;  %v1418_v1 = vld [vmem:[%s1746_s1 + $0x8] sm:$0xff] (!%p289_p2)   ;;  %v1421_v4 = vld [vmem:[%s1748_s3 + $0x10] sm:$0xff] (!%p289_p2)   ;;  %vm384_vm0 = vcmask (!%p289_p2), 261120  }
   0x6   : > { %292 = sbr.rel (%p289_p2) target bundleno = 939 (0x3ab), region = 56  ;;  %p325_p3 = scmp.lt.s32.totalorder (!%p289_p2), %s1175_s13, 31  ;;  %1277 = vmatprep.subr.bf16.mxu0 (!%p289_p2), %v1417_v0  ;;  %v1419_v2 = vld [vmem:[%s1748_s3] sm:$0xff] (!%p289_p2)   ;;  %v1420_v3 = vld [vmem:[%s1748_s3 + $0x8] sm:$0xff] (!%p289_p2)   ;;  %v1422_v14 = vld [vmem:[%s1748_s3 + $0x18] sm:$0xff] (!%p289_p2)  }
   0x7   : > { %1278 = vmatpush3.bf16.msra.mxu0 (!%p289_p2), %v1417_v0  ;;  %1297 = vmatprep.subr.bf16.mxu1 (!%p289_p2), %v1419_v2  ;;  %v1423_v18 = vld [vmem:[%s1748_s3 + $0x20] sm:$0xff] (!%p289_p2)   ;;  %v1424_v22 = vld [vmem:[%s1748_s3 + $0x28] sm:$0xff] (!%p289_p2)   ;;  %v1425_v32 = vld [vmem:[%s1748_s3 + $0x30] sm:$0xff] (!%p289_p2)  }
   0x8   : > { %1279 = vmatprep.subr.bf16.mxu0 (!%p289_p2), %v1418_v1  ;;  %1298 = vmatpush3.bf16.msra.mxu1 (!%p289_p2), %v1419_v2  ;;  %v1426_v33 = vld [vmem:[%s1748_s3 + $0x38] sm:$0xff] (!%p289_p2)   ;;  %v1427_v34 = vld [vmem:[%s1750_s5] sm:$0xff] (!%p289_p2)   ;;  %v1428_v35 = vld [vmem:[%s1750_s5 + $0x8] sm:$0xff] (!%p289_p2)  }
   0x9   : > { %1299 = vmatprep.subr.bf16.mxu1 (!%p289_p2), %v1420_v3  ;;  %v1429_v36 = vld [vmem:[%s1750_s5 + $0x10] sm:$0xff] (!%p289_p2)   ;;  %v1430_v37 = vld [vmem:[%s1750_s5 + $0x18] sm:$0xff] (!%p289_p2)   ;;  %v1431_v38 = vld [vmem:[%s1750_s5 + $0x20] sm:$0xff] (!%p289_p2)  }
   0xa   : > { %v1432_v39 = vld [vmem:[%s1750_s5 + $0x28] sm:$0xff] (!%p289_p2)   ;;  %v1179_v40 = vld [vmem:[%s1747_s2] ss:$0 sm:$0xff] (!%p289_p2) }
   0xb   : > { %1280 = vmatpush3.bf16.msra.mxu0 (!%p289_p2), %v1418_v1 }
   0xc   : > { %1300 = vmatpush3.bf16.msra.mxu1 (!%p289_p2), %v1420_v3  ;;  %1329 = vmatprep.subr.bf16.mxu0 (!%p289_p2), %v1427_v34 }
   0xd   : > { %s1756_s13 = smov (!%p325_p3, %s1175_s13), 31  ;;  %1301 = vmatprep.subr.bf16.mxu1 %v1421_v4 }
   0xe   : > { %s1176_s20 = sshll.u32 %s1756_s13, 3 }
   0xf   : > { %s1561_s23 = scalar_lea.vmem %s1745_s0, %s1176_s20  ;;  %s1714_s24 = scalar_lea.vmem %s1754_s9, %s1176_s20 }
  0x10   : > { %v337_v5 = vld [vmem:[%s1561_s23] sm:$0xff]  ;;  %v338_v6 = vld [vmem:[%s1561_s23 + $0x8] sm:$0xff]  ;;  %v339_v7 = vld [vmem:[%s1561_s23 + $0x10] sm:$0xff]  ;;  %1302 = vmatpush3.bf16.msra.mxu1 %v1421_v4 }
  0x11   : > { %v353_v8 = vpack.c.bf16 %v338_v6, %v337_v5  ;;  %v340_v9 = vld [vmem:[%s1561_s23 + $0x18] sm:$0xff]  ;;  %v341_v10 = vld [vmem:[%s1561_s23 + $0x20] sm:$0xff]  ;;  %v342_v11 = vld [vmem:[%s1561_s23 + $0x28] sm:$0xff]  ;;  %1303 = vmatprep.subr.bf16.mxu1 %v1422_v14 }
  0x12   : > { %v354_v12 = vpack.c.bf16 %v340_v9, %v339_v7  ;;  %v355_v13 = vpack.c.bf16 %v342_v11, %v341_v10  ;;  %v343_v15 = vld [vmem:[%s1561_s23 + $0x30] sm:$0xff]  ;;  %v344_v16 = vld [vmem:[%s1561_s23 + $0x38] sm:$0xff]  ;;  %v345_v17 = vld [vmem:[%s1561_s23 + $0x40] sm:$0xff] }
  0x13   : > { %1281 = vmatprep.mubr.msk.bf16.mxu0 %vm384_vm0, %v353_v8  ;;  %v346_v19 = vld [vmem:[%s1561_s23 + $0x48] sm:$0xff]  ;;  %v356_v20 = vpack.c.bf16 %v344_v16, %v343_v15  ;;  %v347_v23 = vld [vmem:[%s1561_s23 + $0x50] sm:$0xff]  ;;  %v348_v24 = vld [vmem:[%s1561_s23 + $0x58] sm:$0xff] }
  0x14   : > { %1282 = vmatmul.mubr.msk.bf16.vlgmr.msra.gmra.mrb[0].mxu0 %vm384_vm0, %v354_v12  ;;  %v357_v21 = vpack.c.bf16 %v346_v19, %v345_v17  ;;  %1304 = vmatpush3.bf16.msra.mxu1 %v1422_v14  ;;  %v349_v25 = vld [vmem:[%s1561_s23 + $0x60] sm:$0xff]  ;;  %v350_v26 = vld [vmem:[%s1561_s23 + $0x68] sm:$0xff]  ;;  %v358_v27 = vpack.c.bf16 %v348_v24, %v347_v23  ;;  %v351_v29 = vld [vmem:[%s1561_s23 + $0x70] sm:$0xff] }
  0x15   : > { %1285 = vmatprep.mubr.msk.bf16.mxu0 %vm384_vm0, %v355_v13  ;;  %1305 = vmatprep.subr.bf16.mxu1 %v1423_v18  ;;  %v359_v28 = vpack.c.bf16 %v350_v26, %v349_v25  ;;  %v352_v30 = vld [vmem:[%s1561_s23 + $0x78] sm:$0xff] }
  0x16   : > { %v360_v31 = vpack.c.bf16 %v352_v30, %v351_v29  ;;  %1330 = vmatpush3.bf16.msra.mxu0 %v1427_v34  ;;  %v1434_v34 = vld [vmem:[%s1750_s5 + $0x38] sm:$0xff]  }
  0x17   : > { %1331 = vmatprep.subr.bf16.mxu0 %v1428_v35 }
  0x18   : > { %1306 = vmatpush3.bf16.msra.mxu1 %v1423_v18 }
  0x19   : > { %1307 = vmatprep.subr.bf16.mxu1 %v1424_v22 }
  0x1a   : > { %1332 = vmatpush3.bf16.msra.mxu0 %v1428_v35  ;;  %v1435_v35 = vld [vmem:[%s1752_s7] sm:$0xff]  }
  0x1b   : > { %1333 = vmatprep.subr.bf16.mxu0 %v1429_v36 }
  0x1c   : > { %1286 = vmatmul.mubr.msk.bf16.gmra.mrb[4].mxu0 %vm384_vm0, %v356_v20  ;;  %1308 = vmatpush3.bf16.msra.mxu1 %v1424_v22 }
  0x1d   : > { %1289 = vmatprep.mubr.msk.bf16.mxu0 %vm384_vm0, %v357_v21  ;;  %1309 = vmatprep.subr.bf16.mxu1 %v1425_v32 }
  0x1e   : > { %1334 = vmatpush3.bf16.msra.mxu0 %v1429_v36  ;;  %v1436_v36 = vld [vmem:[%s1752_s7 + $0x8] sm:$0xff]  }
  0x1f   : > { %1335 = vmatprep.subr.bf16.mxu0 %v1430_v37 }
  0x20   : > { %1310 = vmatpush3.bf16.msra.mxu1 %v1425_v32 }
  0x21   : > { %1311 = vmatprep.subr.bf16.mxu1 %v1426_v33 }
  0x22   : > { %1336 = vmatpush3.bf16.msra.mxu0 %v1430_v37  ;;  %v1437_v37 = vld [vmem:[%s1752_s7 + $0x10] sm:$0xff]  }
  0x23   : > { %1337 = vmatprep.subr.bf16.mxu0 %v1431_v38 }
  0x24   : > { %1290 = vmatmul.mubr.msk.bf16.gmra.mrb[8].mxu0 %vm384_vm0, %v358_v27  ;;  %1312 = vmatpush3.bf16.msra.mxu1 %v1426_v33  ;;  %v1433_v33 = vld [vmem:[%s1750_s5 + $0x30] sm:$0xff]  }
  0x25   : > { %1293 = vmatprep.mubr.msk.bf16.mxu0 %vm384_vm0, %v359_v28  ;;  %1393 = vmatprep.subr.bf16.mxu1 %v1435_v35 }
  0x26   : > { %1338 = vmatpush3.bf16.msra.mxu0 %v1431_v38  ;;  %v1644_v38 = vld [vmem:[%s1752_s7 + $0x18] sm:$0xff]  }
  0x27   : > { %1339 = vmatprep.subr.bf16.mxu0 %v1432_v39 }
  0x2a   : > { %1340 = vmatpush3.bf16.msra.mxu0 %v1432_v39  ;;  %v1650_v39 = vld [vmem:[%s1752_s7 + $0x20] sm:$0xff]  }
  0x2b   : > { %1341 = vmatprep.subr.bf16.mxu0 %v1433_v33 }
  0x2c   : > { %1294 = vmatmul.mubr.msk.bf16.gmra.mrb[12].mxu0 %vm384_vm0, %v360_v31 }
  0x2e   : > { %1342 = vmatpush3.bf16.msra.mxu0 %v1433_v33 }
  0x2f   : > { %1343 = vmatprep.subr.bf16.mxu0 %v1434_v34 }
  0x32   : > { %1344 = vmatpush3.bf16.msra.mxu0 %v1434_v34  ;;  %v1441_v34 = vld [vmem:[%s1752_s7 + $0x30] sm:$0xff]  }
  0x33   : > { %1361 = vmatprep.subr.bf16.mxu0 %v1435_v35 }
  0xe7   : > { %v1283_v41 = vpop.f32.mrb[0].mxu0 }
  0xe8   : > { %v452_v42 = vadd.f32 %v1283_v41, %v1179_v40  ;;  %v443_v43 = vpop.f32.mrb[1].mxu0  ;;  %v1665_v41 = vld [vmem:[%s1749_s4] ss:$0 sm:$0xff] }
  0xe9   : > { %v444_v44 = vadd.f32 %v1179_v40, %v443_v43  ;;  %v1284_v45 = vpop.f32.mrb[2].mxu0 }
  0xea   : > { %v455_v46 = vadd.f32 %v1284_v45, %v1179_v40  ;;  %v446_v47 = vpop.f32.mrb[3].mxu0  ;;  %v508_v49 = vmax.f32 %v452_v42, 0.0 }
  0xeb   : > { %v447_v48 = vadd.f32 %v1179_v40, %v446_v47  ;;  %v506_v51 = vmax.f32 %v444_v44, 0.0 }
  0xec   : > { %v509_v50 = vmax.f32 %v455_v46, 0.0 }
  0xed   : > { %v507_v52 = vmax.f32 %v447_v48, 0.0 }
  0xee   : > { %v523_v53 = vpack.c.bf16 %v509_v50, %v508_v49 }
  0xef   : > { %v1287_v54 = vpop.f32.mrb[4].mxu0  ;;  %v522_v55 = vpack.c.bf16 %v507_v52, %v506_v51 }
  0xf0   : > { %v468_v56 = vadd.f32 %v1287_v54, %v1179_v40  ;;  %v459_v57 = vpop.f32.mrb[5].mxu0 }
  0xf1   : > { %v460_v58 = vadd.f32 %v1179_v40, %v459_v57  ;;  %v1288_v59 = vpop.f32.mrb[6].mxu0  ;;  %1313 = vmatprep.mubr.bf16.mxu1 %v522_v55 }
  0xf2   : > { %v471_v60 = vadd.f32 %v1288_v59, %v1179_v40  ;;  %v462_v61 = vpop.f32.mrb[7].mxu0  ;;  %1314 = vmatmul.mubr.bf16.vlgmr.msra.gmra.mrb[0].mxu1 %v523_v53  ;;  %v512_v63 = vmax.f32 %v468_v56, 0.0 }
  0xf3   : > { %v463_v62 = vadd.f32 %v1179_v40, %v462_v61  ;;  %v510_v1 = vmax.f32 %v460_v58, 0.0  ;;  %1401 = vmatpush3.bf16.msra.mxu1 %v1435_v35 }
  0xf4   : > { %v513_v0 = vmax.f32 %v471_v60, 0.0  ;;  %1394 = vmatprep.subr.bf16.mxu1 %v1436_v36 }
  0xf5   : > { %v511_v2 = vmax.f32 %v463_v62, 0.0 }
  0xf6   : > { %v525_v3 = vpack.c.bf16 %v513_v0, %v512_v63 }
  0xf7   : > { %v524_v4 = vpack.c.bf16 %v511_v2, %v510_v1  ;;  %v1291_v5 = vpop.f32.mrb[8].mxu0  ;;  %1402 = vmatpush3.bf16.msra.mxu1 %v1436_v36 }
  0xf8   : > { %v484_v6 = vadd.f32 %v1291_v5, %v1179_v40  ;;  %v475_v7 = vpop.f32.mrb[9].mxu0  ;;  %1395 = vmatprep.subr.bf16.mxu1 %v1437_v37 }
  0xf9   : > { %v476_v8 = vadd.f32 %v1179_v40, %v475_v7  ;;  %v1292_v9 = vpop.f32.mrb[10].mxu0  ;;  %1317 = vmatprep.mubr.bf16.mxu1 %v524_v4 }
  0xfa   : > { %v487_v10 = vadd.f32 %v1292_v9, %v1179_v40  ;;  %v478_v11 = vpop.f32.mrb[11].mxu0  ;;  %1318 = vmatmul.mubr.bf16.gmra.mrb[4].mxu1 %v525_v3  ;;  %v516_v13 = vmax.f32 %v484_v6, 0.0 }
  0xfb   : > { %v479_v12 = vadd.f32 %v1179_v40, %v478_v11  ;;  %v514_v15 = vmax.f32 %v476_v8, 0.0  ;;  %1403 = vmatpush3.bf16.msra.mxu1 %v1437_v37 }
  0xfc   : > { %v517_v14 = vmax.f32 %v487_v10, 0.0  ;;  %1396 = vmatprep.subr.bf16.mxu1 %v1644_v38 }
  0xfd   : > { %v515_v16 = vmax.f32 %v479_v12, 0.0 }
  0xfe   : > { %v527_v17 = vpack.c.bf16 %v517_v14, %v516_v13 }
  0xff   : > { %v526_v18 = vpack.c.bf16 %v515_v16, %v514_v15  ;;  %v1295_v19 = vpop.f32.mrb[12].mxu0  ;;  %1404 = vmatpush3.bf16.msra.mxu1 %v1644_v38 }
 0x100   : > { %v500_v20 = vadd.f32 %v1295_v19, %v1179_v40  ;;  %v491_v21 = vpop.f32.mrb[13].mxu0  ;;  %1397 = vmatprep.subr.bf16.mxu1 %v1650_v39 }
 0x101   : > { %v492_v22 = vadd.f32 %v1179_v40, %v491_v21  ;;  %v1296_v23 = vpop.f32.mrb[14].mxu0  ;;  %1321 = vmatprep.mubr.bf16.mxu1 %v526_v18 }
 0x102   : > { %v503_v24 = vadd.f32 %v1296_v23, %v1179_v40  ;;  %v494_v25 = vpop.f32.mrb[15].mxu0  ;;  %1322 = vmatmul.mubr.bf16.gmra.mrb[8].mxu1 %v527_v17  ;;  %v520_v27 = vmax.f32 %v500_v20, 0.0 }
 0x103   : > { %v495_v26 = vadd.f32 %v1179_v40, %v494_v25  ;;  %v518_v29 = vmax.f32 %v492_v22, 0.0  ;;  %v1657_v40 = vld [vmem:[%s1752_s7 + $0x28] sm:$0xff]   ;;  %1405 = vmatpush3.bf16.msra.mxu1 %v1650_v39 }
 0x104   : > { %v521_v28 = vmax.f32 %v503_v24, 0.0  ;;  %1398 = vmatprep.subr.bf16.mxu1 %v1657_v40 }
 0x105   : > { %v519_v30 = vmax.f32 %v495_v26, 0.0 }
 0x106   : > { %v529_v31 = vpack.c.bf16 %v521_v28, %v520_v27 }
 0x107   : > { %v528_v32 = vpack.c.bf16 %v519_v30, %v518_v29  ;;  %1406 = vmatpush3.bf16.msra.mxu1 %v1657_v40 }
 0x108   : > { %1399 = vmatprep.subr.bf16.mxu1 %v1441_v34 }
 0x109   : > { %1325 = vmatprep.mubr.bf16.mxu1 %v528_v32 }
 0x10a   : > { %1326 = vmatmul.mubr.bf16.gmra.mrb[12].mxu1 %v529_v31 }
 0x10b   : > { %1407 = vmatpush3.bf16.msra.mxu1 %v1441_v34 }
 0x1c5   : > { %v1315_v42 = vpop.f32.mrb[0].mxu1 }
 0x1c6   : > { %v644_v43 = vadd.f32 %v1315_v42, %v1665_v41  ;;  %v635_v44 = vpop.f32.mrb[1].mxu1 }
 0x1c7   : > { %v636_v45 = vadd.f32 %v1665_v41, %v635_v44  ;;  %v1316_v46 = vpop.f32.mrb[2].mxu1 }
 0x1c8   : > { %v647_v47 = vadd.f32 %v1316_v46, %v1665_v41  ;;  %v638_v48 = vpop.f32.mrb[3].mxu1  ;;  %v700_v50 = vmax.f32 %v644_v43, 0.0 }
 0x1c9   : > { %v639_v49 = vadd.f32 %v1665_v41, %v638_v48  ;;  %v698_v52 = vmax.f32 %v636_v45, 0.0 }
 0x1ca   : > { %v701_v51 = vmax.f32 %v647_v47, 0.0 }
 0x1cb   : > { %v699_v53 = vmax.f32 %v639_v49, 0.0 }
 0x1cc   : > { %v715_v54 = vpack.c.bf16 %v701_v51, %v700_v50 }
 0x1cd   : > { %v714_v55 = vpack.c.bf16 %v699_v53, %v698_v52  ;;  %v1319_v56 = vpop.f32.mrb[4].mxu1 }
 0x1ce   : > { %v660_v57 = vadd.f32 %v1319_v56, %v1665_v41  ;;  %v651_v58 = vpop.f32.mrb[5].mxu1 }
 0x1cf   : > { %v652_v59 = vadd.f32 %v1665_v41, %v651_v58  ;;  %v1320_v60 = vpop.f32.mrb[6].mxu1  ;;  %1345 = vmatprep.mubr.bf16.mxu0 %v714_v55 }
 0x1d0   : > { %v663_v61 = vadd.f32 %v1320_v60, %v1665_v41  ;;  %v654_v62 = vpop.f32.mrb[7].mxu1  ;;  %1346 = vmatmul.mubr.bf16.vlgmr.msra.gmra.mrb[16].mxu0 %v715_v54  ;;  %v704_v0 = vmax.f32 %v660_v57, 0.0 }
 0x1d1   : > { %v655_v63 = vadd.f32 %v1665_v41, %v654_v62  ;;  %1362 = vmatpush3.bf16.msra.mxu0 %v1435_v35  ;;  %v702_v2 = vmax.f32 %v652_v59, 0.0  ;;  %v1442_v35 = vld [vmem:[%s1752_s7 + $0x38] sm:$0xff]  }
 0x1d2   : > { %v705_v1 = vmax.f32 %v663_v61, 0.0  ;;  %1363 = vmatprep.subr.bf16.mxu0 %v1436_v36  ;;  %1400 = vmatprep.subr.bf16.mxu1 %v1442_v35 }
 0x1d3   : > { %v703_v3 = vmax.f32 %v655_v63, 0.0  ;;  %1408 = vmatpush3.bf16.msra.mxu1 %v1442_v35 }
 0x1d4   : > { %v717_v4 = vpack.c.bf16 %v705_v1, %v704_v0 }
 0x1d5   : > { %v716_v5 = vpack.c.bf16 %v703_v3, %v702_v2  ;;  %v1323_v6 = vpop.f32.mrb[8].mxu1  ;;  %1364 = vmatpush3.bf16.msra.mxu0 %v1436_v36  ;;  %v1199_v36 = vld [vmem:[%s1751_s6] ss:$0 sm:$0xff] }
 0x1d6   : > { %v676_v7 = vadd.f32 %v1323_v6, %v1665_v41  ;;  %v667_v8 = vpop.f32.mrb[9].mxu1  ;;  %1365 = vmatprep.subr.bf16.mxu0 %v1437_v37 }
 0x1d7   : > { %v668_v9 = vadd.f32 %v1665_v41, %v667_v8  ;;  %v1324_v10 = vpop.f32.mrb[10].mxu1  ;;  %1349 = vmatprep.mubr.bf16.mxu0 %v716_v5 }
 0x1d8   : > { %v679_v11 = vadd.f32 %v1324_v10, %v1665_v41  ;;  %v670_v12 = vpop.f32.mrb[11].mxu1  ;;  %1350 = vmatmul.mubr.bf16.gmra.mrb[20].mxu0 %v717_v4  ;;  %v708_v14 = vmax.f32 %v676_v7, 0.0 }
 0x1d9   : > { %v671_v13 = vadd.f32 %v1665_v41, %v670_v12  ;;  %1366 = vmatpush3.bf16.msra.mxu0 %v1437_v37  ;;  %v706_v16 = vmax.f32 %v668_v9, 0.0 }
 0x1da   : > { %v709_v15 = vmax.f32 %v679_v11, 0.0  ;;  %1367 = vmatprep.subr.bf16.mxu0 %v1644_v38 }
 0x1db   : > { %v707_v17 = vmax.f32 %v671_v13, 0.0 }
 0x1dc   : > { %v719_v18 = vpack.c.bf16 %v709_v15, %v708_v14 }
 0x1dd   : > { %v718_v19 = vpack.c.bf16 %v707_v17, %v706_v16  ;;  %v1327_v20 = vpop.f32.mrb[12].mxu1  ;;  %1368 = vmatpush3.bf16.msra.mxu0 %v1644_v38 }
 0x1de   : > { %v692_v21 = vadd.f32 %v1327_v20, %v1665_v41  ;;  %v683_v22 = vpop.f32.mrb[13].mxu1  ;;  %1369 = vmatprep.subr.bf16.mxu0 %v1650_v39 }
 0x1df   : > { %v684_v23 = vadd.f32 %v1665_v41, %v683_v22  ;;  %v1328_v24 = vpop.f32.mrb[14].mxu1  ;;  %1353 = vmatprep.mubr.bf16.mxu0 %v718_v19 }
 0x1e0   : > { %v695_v25 = vadd.f32 %v1328_v24, %v1665_v41  ;;  %v686_v26 = vpop.f32.mrb[15].mxu1  ;;  %1354 = vmatmul.mubr.bf16.gmra.mrb[24].mxu0 %v719_v18  ;;  %v712_v28 = vmax.f32 %v692_v21, 0.0 }
 0x1e1   : > { %v687_v27 = vadd.f32 %v1665_v41, %v686_v26  ;;  %1370 = vmatpush3.bf16.msra.mxu0 %v1650_v39  ;;  %v710_v30 = vmax.f32 %v684_v23, 0.0 }
 0x1e2   : > { %v713_v29 = vmax.f32 %v695_v25, 0.0  ;;  %1371 = vmatprep.subr.bf16.mxu0 %v1657_v40 }
 0x1e3   : > { %v711_v31 = vmax.f32 %v687_v27, 0.0 }
 0x1e4   : > { %v721_v32 = vpack.c.bf16 %v713_v29, %v712_v28  ;;  %v1701_v29 = vld [vmem:[%s1753_s8] ss:$0 sm:$0xff] }
 0x1e5   : > { %v720_v33 = vpack.c.bf16 %v711_v31, %v710_v30  ;;  %1372 = vmatpush3.bf16.msra.mxu0 %v1657_v40 }
 0x1e6   : > { %1373 = vmatprep.subr.bf16.mxu0 %v1441_v34 }
 0x1e7   : > { %1357 = vmatprep.mubr.bf16.mxu0 %v720_v33 }
 0x1e8   : > { %1358 = vmatmul.mubr.bf16.gmra.mrb[28].mxu0 %v721_v32 }
 0x1e9   : > { %1374 = vmatpush3.bf16.msra.mxu0 %v1441_v34 }
 0x1ea   : > { %1375 = vmatprep.subr.bf16.mxu0 %v1442_v35 }
 0x1ed   : > { %1376 = vmatpush3.bf16.msra.mxu0 %v1442_v35 }
 0x2a3   : > { %v1347_v37 = vpop.f32.mrb[16].mxu0 }
 0x2a4   : > { %v836_v38 = vadd.f32 %v1347_v37, %v1199_v36  ;;  %v827_v39 = vpop.f32.mrb[17].mxu0 }
 0x2a5   : > { %v828_v40 = vadd.f32 %v1199_v36, %v827_v39  ;;  %v1348_v41 = vpop.f32.mrb[18].mxu0 }
 0x2a6   : > { %v839_v42 = vadd.f32 %v1348_v41, %v1199_v36  ;;  %v830_v43 = vpop.f32.mrb[19].mxu0  ;;  %v892_v45 = vmax.f32 %v836_v38, 0.0 }
 0x2a7   : > { %v831_v44 = vadd.f32 %v1199_v36, %v830_v43  ;;  %v890_v47 = vmax.f32 %v828_v40, 0.0 }
 0x2a8   : > { %v893_v46 = vmax.f32 %v839_v42, 0.0 }
 0x2a9   : > { %v891_v48 = vmax.f32 %v831_v44, 0.0 }
 0x2aa   : > { %v907_v49 = vpack.c.bf16 %v893_v46, %v892_v45 }
 0x2ab   : > { %v906_v50 = vpack.c.bf16 %v891_v48, %v890_v47  ;;  %v1351_v51 = vpop.f32.mrb[20].mxu0 }
 0x2ac   : > { %v852_v52 = vadd.f32 %v1351_v51, %v1199_v36  ;;  %v843_v53 = vpop.f32.mrb[21].mxu0 }
 0x2ad   : > { %v844_v54 = vadd.f32 %v1199_v36, %v843_v53  ;;  %v1352_v55 = vpop.f32.mrb[22].mxu0  ;;  %1377 = vmatprep.mubr.bf16.mxu0 %v906_v50 }
 0x2ae   : > { %v855_v56 = vadd.f32 %v1352_v55, %v1199_v36  ;;  %v846_v57 = vpop.f32.mrb[23].mxu0  ;;  %1378 = vmatmul.mubr.bf16.vlgmr.msra.gmra.mrb[32].mxu0 %v907_v49  ;;  %v896_v59 = vmax.f32 %v852_v52, 0.0 }
 0x2af   : > { %v847_v58 = vadd.f32 %v1199_v36, %v846_v57  ;;  %v894_v61 = vmax.f32 %v844_v54, 0.0 }
 0x2b0   : > { %v897_v60 = vmax.f32 %v855_v56, 0.0 }
 0x2b1   : > { %v895_v62 = vmax.f32 %v847_v58, 0.0 }
 0x2b2   : > { %v909_v63 = vpack.c.bf16 %v897_v60, %v896_v59 }
 0x2b3   : > { %v908_v0 = vpack.c.bf16 %v895_v62, %v894_v61  ;;  %v1355_v1 = vpop.f32.mrb[24].mxu0 }
 0x2b4   : > { %v868_v2 = vadd.f32 %v1355_v1, %v1199_v36  ;;  %v859_v3 = vpop.f32.mrb[25].mxu0 }
 0x2b5   : > { %v860_v4 = vadd.f32 %v1199_v36, %v859_v3  ;;  %v1356_v5 = vpop.f32.mrb[26].mxu0  ;;  %1381 = vmatprep.mubr.bf16.mxu1 %v908_v0 }
 0x2b6   : > { %v871_v6 = vadd.f32 %v1356_v5, %v1199_v36  ;;  %v862_v7 = vpop.f32.mrb[27].mxu0  ;;  %1382 = vmatmul.mubr.bf16.vlgmr.msra.gmra.mrb[16].mxu1 %v909_v63  ;;  %v900_v9 = vmax.f32 %v868_v2, 0.0 }
 0x2b7   : > { %v863_v8 = vadd.f32 %v1199_v36, %v862_v7  ;;  %v898_v11 = vmax.f32 %v860_v4, 0.0 }
 0x2b8   : > { %v901_v10 = vmax.f32 %v871_v6, 0.0 }
 0x2b9   : > { %v899_v12 = vmax.f32 %v863_v8, 0.0 }
 0x2ba   : > { %v911_v13 = vpack.c.bf16 %v901_v10, %v900_v9 }
 0x2bb   : > { %v910_v14 = vpack.c.bf16 %v899_v12, %v898_v11  ;;  %v1359_v15 = vpop.f32.mrb[28].mxu0 }
 0x2bc   : > { %v884_v16 = vadd.f32 %v1359_v15, %v1199_v36  ;;  %v875_v17 = vpop.f32.mrb[29].mxu0 }
 0x2bd   : > { %v876_v18 = vadd.f32 %v1199_v36, %v875_v17  ;;  %v1360_v19 = vpop.f32.mrb[30].mxu0  ;;  %1385 = vmatprep.mubr.bf16.mxu1 %v910_v14 }
 0x2be   : > { %v887_v20 = vadd.f32 %v1360_v19, %v1199_v36  ;;  %v878_v21 = vpop.f32.mrb[31].mxu0  ;;  %1386 = vmatmul.mubr.bf16.gmra.mrb[20].mxu1 %v911_v13  ;;  %v904_v23 = vmax.f32 %v884_v16, 0.0 }
 0x2bf   : > { %v879_v22 = vadd.f32 %v1199_v36, %v878_v21  ;;  %v902_v25 = vmax.f32 %v876_v18, 0.0 }
 0x2c0   : > { %v905_v24 = vmax.f32 %v887_v20, 0.0 }
 0x2c1   : > { %v903_v26 = vmax.f32 %v879_v22, 0.0 }
 0x2c2   : > { %v913_v27 = vpack.c.bf16 %v905_v24, %v904_v23 }
 0x2c3   : > { %v912_v28 = vpack.c.bf16 %v903_v26, %v902_v25 }
 0x2c5   : > { %1389 = vmatprep.mubr.bf16.mxu1 %v912_v28 }
 0x2c6   : > { %1390 = vmatmul.mubr.bf16.gmra.mrb[24].mxu1 %v913_v27 }
 0x381   : > { %v1379_v30 = vpop.f32.mrb[32].mxu0 }
 0x382   : > { %v1028_v31 = vadd.f32 %v1379_v30, %v1701_v29  ;;  %v1019_v32 = vpop.f32.mrb[33].mxu0 }
 0x383   : > { %v1020_v33 = vadd.f32 %v1701_v29, %v1019_v32  ;;  %v1380_v34 = vpop.f32.mrb[34].mxu0 }
 0x384   : > { %1443 = vtanh.f32 %v1028_v31  ;;  %v1031_v35 = vadd.f32 %v1380_v34, %v1701_v29  ;;  %v1022_v36 = vpop.f32.mrb[35].mxu0 }
 0x385   : > { %1445 = vtanh.f32 %v1020_v33  ;;  %v1023_v37 = vadd.f32 %v1701_v29, %v1022_v36 }
 0x386   : > { %1447 = vtanh.f32 %v1031_v35 }
 0x387   : > { %1449 = vtanh.f32 %v1023_v37 }
 0x389   : > { %v1383_v38 = vpop.f32.mrb[16].mxu1 }
 0x38a   : > { %v1044_v39 = vadd.f32 %v1383_v38, %v1701_v29  ;;  %v1035_v40 = vpop.f32.mrb[17].mxu1 }
 0x38b   : > { %v1036_v41 = vadd.f32 %v1701_v29, %v1035_v40  ;;  %v1384_v42 = vpop.f32.mrb[18].mxu1 }
 0x38c   : > { %1451 = vtanh.f32 %v1044_v39  ;;  %v1047_v43 = vadd.f32 %v1384_v42, %v1701_v29  ;;  %v1038_v44 = vpop.f32.mrb[19].mxu1 }
 0x38d   : > { %1453 = vtanh.f32 %v1036_v41  ;;  %v1039_v45 = vadd.f32 %v1701_v29, %v1038_v44 }
 0x38e   : > { %v1444_v46 = vpop.eup %1443  ;;  %1455 = vtanh.f32 %v1047_v43 }
 0x38f   : > { %v1446_v47 = vpop.eup %1445  ;;  %1100 = vst [vmem:[%s1714_s24 + $0x10] sm:$0xff] %v1444_v46  ;;  %1457 = vtanh.f32 %v1039_v45 }
 0x390   : > { %v1448_v48 = vpop.eup %1447  ;;  %1098 = vst [vmem:[%s1714_s24] sm:$0xff] %v1446_v47 }
 0x391   : > { %v1450_v49 = vpop.eup %1449  ;;  %1101 = vst [vmem:[%s1714_s24 + $0x18] sm:$0xff] %v1448_v48  ;;  %v1387_v50 = vpop.f32.mrb[20].mxu1 }
 0x392   : > { %1099 = vst [vmem:[%s1714_s24 + $0x8] sm:$0xff] %v1450_v49  ;;  %v1060_v51 = vadd.f32 %v1387_v50, %v1701_v29  ;;  %v1051_v52 = vpop.f32.mrb[21].mxu1 }
 0x393   : > { %v1052_v53 = vadd.f32 %v1701_v29, %v1051_v52  ;;  %v1388_v54 = vpop.f32.mrb[22].mxu1 }
 0x394   : > { %1459 = vtanh.f32 %v1060_v51  ;;  %v1063_v55 = vadd.f32 %v1388_v54, %v1701_v29  ;;  %v1054_v56 = vpop.f32.mrb[23].mxu1 }
 0x395   : > { %1461 = vtanh.f32 %v1052_v53  ;;  %v1055_v57 = vadd.f32 %v1701_v29, %v1054_v56 }
 0x396   : > { %v1452_v58 = vpop.eup %1451  ;;  %1463 = vtanh.f32 %v1063_v55 }
 0x397   : > { %v1454_v59 = vpop.eup %1453  ;;  %1104 = vst [vmem:[%s1714_s24 + $0x30] sm:$0xff] %v1452_v58  ;;  %1465 = vtanh.f32 %v1055_v57 }
 0x398   : > { %v1456_v60 = vpop.eup %1455  ;;  %1102 = vst [vmem:[%s1714_s24 + $0x20] sm:$0xff] %v1454_v59 }
 0x399   : > { %v1458_v61 = vpop.eup %1457  ;;  %1105 = vst [vmem:[%s1714_s24 + $0x38] sm:$0xff] %v1456_v60  ;;  %v1391_v62 = vpop.f32.mrb[24].mxu1 }
 0x39a   : > { %1103 = vst [vmem:[%s1714_s24 + $0x28] sm:$0xff] %v1458_v61  ;;  %v1076_v63 = vadd.f32 %v1391_v62, %v1701_v29  ;;  %v1067_v0 = vpop.f32.mrb[25].mxu1 }
 0x39b   : > { %v1068_v1 = vadd.f32 %v1701_v29, %v1067_v0  ;;  %v1392_v2 = vpop.f32.mrb[26].mxu1 }
 0x39c   : > { %1467 = vtanh.f32 %v1076_v63  ;;  %v1079_v3 = vadd.f32 %v1392_v2, %v1701_v29  ;;  %v1070_v4 = vpop.f32.mrb[27].mxu1 }
 0x39d   : > { %1469 = vtanh.f32 %v1068_v1  ;;  %v1071_v5 = vadd.f32 %v1701_v29, %v1070_v4 }
 0x39e   : > { %v1460_v6 = vpop.eup %1459  ;;  %1471 = vtanh.f32 %v1079_v3 }
 0x39f   : > { %v1462_v7 = vpop.eup %1461  ;;  %1108 = vst [vmem:[%s1714_s24 + $0x50] sm:$0xff] %v1460_v6  ;;  %1473 = vtanh.f32 %v1071_v5 }
 0x3a0   : > { %v1464_v8 = vpop.eup %1463  ;;  %1106 = vst [vmem:[%s1714_s24 + $0x40] sm:$0xff] %v1462_v7 }
 0x3a1   : > { %v1466_v9 = vpop.eup %1465  ;;  %1109 = vst [vmem:[%s1714_s24 + $0x58] sm:$0xff] %v1464_v8 }
 0x3a2   : > { %1107 = vst [vmem:[%s1714_s24 + $0x48] sm:$0xff] %v1466_v9 }
 0x3a6   : > { %v1468_v10 = vpop.eup %1467 }
 0x3a7   : > { %v1470_v11 = vpop.eup %1469  ;;  %1112 = vst [vmem:[%s1714_s24 + $0x70] sm:$0xff] %v1468_v10 }
 0x3a8   : > { %v1472_v12 = vpop.eup %1471  ;;  %1110 = vst [vmem:[%s1714_s24 + $0x60] sm:$0xff] %v1470_v11 }
 0x3a9   : > { %v1474_v13 = vpop.eup %1473  ;;  %1113 = vst [vmem:[%s1714_s24 + $0x78] sm:$0xff] %v1472_v12 }
 0x3aa   : > { %1111 = vst [vmem:[%s1714_s24 + $0x68] sm:$0xff] %v1474_v13 }
 0x3ab PF: > { %s19_s30 = sadd.s32 1, %s1481_s30  }
 0x3ac   : > { %p16_p4 = scmp.ge.s32.totalorder %s19_s30, 4  }
 0x3ae   :  { %18 = sbr.rel (!%p16_p4) target bundleno = 1 (0x1), region = 86 }

</bundles_post_ra>
